<compile_context>
chip_gen: v7x
topology: tpu7x:2x2x1
jax: 0.10.0
libtpu: 0.0.40
codegen_flags: <defaults>
</compile_context>

<pallas_src>
import math

import numpy as np
import jax
import jax.numpy as jnp
from jax.experimental import pallas as pl
from jax.experimental.pallas import tpu as pltpu

# ----------------------------- configuration ---------------------------------
B = 2          # batch
S = 8          # sequence length
DIM = 32       # model dim
NUM_HEAD = 4
HEAD_DIM = 8
HIDDEN = NUM_HEAD * HEAD_DIM       # 32
QKV_H = 3 * HEAD_DIM               # per-head [q|k|v] lane block = 24
BS = B * S                         # 16 activation rows
NROWS = B * NUM_HEAD * S           # 64 packed attention rows
NEG = -1e9


# ------------------------------- kernel --------------------------------------
def attention_kernel(x_ref, wqkv_ref, bqkv_ref, rot_ref, cos_ref, sin_ref,
                     mask_ref, wo_ref, bo_ref, y_ref):
    # --- fused QKV projection -------------------------------------------------
    # wqkv columns are grouped per head: [h0: q|k|v][h1: q|k|v]...; the
    # 1/sqrt(HEAD_DIM) attention scale is folded into the Q columns (RoPE is
    # linear, so scaling q before rotation == scaling the scores).
    qkv = jnp.dot(x_ref[...], wqkv_ref[...],
                  preferred_element_type=jnp.float32) + bqkv_ref[...]   # (BS, 96)

    # --- pack (batch, head, seq) onto the sublane axis ONCE --------------------
    # (BS, NUM_HEAD*QKV_H) -> (B*NUM_HEAD*S, QKV_H): 4 static lane slices,
    # major-dim reshapes and one major-axis concat; done once for q, k and v.
    parts = [qkv[:, h * QKV_H:(h + 1) * QKV_H].reshape(B, 1, S, QKV_H)
             for h in range(NUM_HEAD)]
    qkv_p = jnp.concatenate(parts, axis=1).reshape(NROWS, QKV_H)        # (64, 24)

    qk_p = qkv_p[:, :2 * HEAD_DIM]                                      # (64, 16)
    v_p = qkv_p[:, 2 * HEAD_DIM:]                                       # (64, 8)

    # --- RoPE: rotate_half as ONE constant signed-permutation MXU matmul -------
    # rot_ref = block_diag(R8, R8) applies rotate_half to the q and k lane
    # blocks jointly; cos/sin are pre-packed to the (b, h, s) row order and
    # duplicated over the [q|k] lane blocks.
    qk_rot = jnp.dot(qk_p, rot_ref[...], preferred_element_type=jnp.float32)
    qk_p = qk_p * cos_ref[...] + qk_rot * sin_ref[...]
    q_p = qk_p[:, :HEAD_DIM]                                            # (64, 8)
    k_p = qk_p[:, HEAD_DIM:]                                            # (64, 8)

    # --- packed 2-D attention over all (batch, head) pairs ---------------------
    # One (64,8)x(8,64) score matmul; the precomputed block-diagonal(+causal)
    # additive mask keeps different (batch, head) rows from attending to each
    # other (off-block entries underflow to exactly 0 after exp).
    scores = jnp.einsum('qd,kd->qk', q_p, k_p,
                        preferred_element_type=jnp.float32)             # (64, 64)
    scores = scores + mask_ref[...]
    scores = scores - jnp.max(scores, axis=-1, keepdims=True)           # stable
    p = jnp.exp(scores)
    p = p / jnp.sum(p, axis=-1, keepdims=True)        # exact: EUP/VPU are idle
    ctx_p = jnp.dot(p, v_p, preferred_element_type=jnp.float32)         # (64, 8)

    # --- output projection; un-pack folded into 4 per-head matmuls -------------
    # The MXU is ~idle, so 4 tiny (16,8)@(8,32) matmuls are free and avoid a
    # lane-concat relayout of the context back to (BS, HIDDEN).
    ctx4 = ctx_p.reshape(B, NUM_HEAD, S, HEAD_DIM)
    wo = wo_ref[...]
    acc = jnp.zeros((BS, DIM), jnp.float32)
    for h in range(NUM_HEAD):                         # static, unrolled
        ctx_h = ctx4[:, h, :, :].reshape(BS, HEAD_DIM)
        acc = acc + jnp.dot(ctx_h, wo[h * HEAD_DIM:(h + 1) * HEAD_DIM, :],
                            preferred_element_type=jnp.float32)
    y_ref[...] = acc + bo_ref[...]


# ----------------------- one-time parameter preparation -----------------------
def prepare_attention_params(wq, bq, wk, bk, wv, bv, wo, bo, cos, sin, mask):
    """Hoisted out of the hot path: fuse/scale weights, build the RoPE
    permutation matrix, pack cos/sin and build the block-diagonal mask ONCE."""
    scale = 1.0 / math.sqrt(HEAD_DIM)
    wq_s, bq_s = wq * scale, bq * scale

    # Fused QKV weight/bias with per-head column grouping [q(8) | k(8) | v(8)].
    w_parts, b_parts = [], []
    for h in range(NUM_HEAD):
        sl = slice(h * HEAD_DIM, (h + 1) * HEAD_DIM)
        w_parts += [wq_s[:, sl], wk[:, sl], wv[:, sl]]
        b_parts += [bq_s[:, sl], bk[:, sl], bv[:, sl]]
    wqkv = jnp.concatenate(w_parts, axis=1)            # (DIM, NUM_HEAD*24) = (32, 96)
    bqkv = jnp.concatenate(b_parts, axis=1)            # (1,   NUM_HEAD*24)

    # rotate_half as a signed permutation matrix: (t @ R8)[:, j] = rotate_half(t)[:, j].
    d2 = HEAD_DIM // 2
    r8 = np.zeros((HEAD_DIM, HEAD_DIM), np.float32)
    for j in range(d2):
        r8[j + d2, j] = -1.0        # out[:, j]      = -in[:, j + d2]
        r8[j, j + d2] = 1.0         # out[:, j + d2] =  in[:, j]
    r16 = np.zeros((2 * HEAD_DIM, 2 * HEAD_DIM), np.float32)
    r16[:HEAD_DIM, :HEAD_DIM] = r8
    r16[HEAD_DIM:, HEAD_DIM:] = r8
    rot = jnp.asarray(r16)                              # (16, 16)

    # cos/sin in the packed (b, h, s) row order, duplicated over [q|k] lanes.
    cos_qk = jnp.concatenate([cos, cos], axis=-1)       # (S, 16)
    sin_qk = jnp.concatenate([sin, sin], axis=-1)       # (S, 16)
    cos_p = jnp.tile(cos_qk, (B * NUM_HEAD, 1))         # (64, 16)
    sin_p = jnp.tile(sin_qk, (B * NUM_HEAD, 1))         # (64, 16)

    # Block-diagonal (per (batch, head)) + causal additive mask for packed scores.
    nb = B * NUM_HEAD
    eye = jnp.eye(nb, dtype=jnp.float32)
    block = jnp.kron(eye, jnp.ones((S, S), jnp.float32))
    mask_p = jnp.kron(eye, mask.astype(jnp.float32)) + (1.0 - block) * NEG   # (64, 64)

    return (wqkv, bqkv, rot, cos_p, sin_p, mask_p, wo, bo)


# --------------------------------- forward ------------------------------------
@jax.jit
def attention_forward(x, wqkv, bqkv, rot, cos_p, sin_p, mask_p, wo, bo):
    x_flat = x.reshape(BS, DIM)
    vmem = pl.BlockSpec(memory_space=pltpu.MemorySpace.VMEM)
    # Single gridless invocation: the whole problem (< 50 KiB) lives in VMEM.
    # TODO(synk): for v7x (2 TensorCores/chip) add a "parallel" grid axis (or
    # core_map) once B*S is large enough to split; gridless uses one core.
    y_flat = pl.pallas_call(
        attention_kernel,
        out_shape=jax.ShapeDtypeStruct((BS, DIM), jnp.float32),
        in_specs=[vmem] * 9,
        out_specs=vmem,
    )(x_flat, wqkv, bqkv, rot, cos_p, sin_p, mask_p, wo, bo)
    return y_flat.reshape(B, S, DIM)


# ----------------------------- pure-JAX reference -----------------------------
def attention_reference(x, cos, sin, mask, wq, bq, wk, bk, wv, bv, wo, bo):
    bsz, seqlen, _ = x.shape
    with jax.default_matmul_precision("float32"):
        q = x @ wq + bq[0]
        k = x @ wk + bk[0]
        v = x @ wv + bv[0]
        q = q.reshape(bsz, seqlen, NUM_HEAD, HEAD_DIM).transpose(0, 2, 1, 3)
        k = k.reshape(bsz, seqlen, NUM_HEAD, HEAD_DIM).transpose(0, 2, 1, 3)
        v = v.reshape(bsz, seqlen, NUM_HEAD, HEAD_DIM).transpose(0, 2, 1, 3)

        def rot_half(t):
            d2 = HEAD_DIM // 2
            return jnp.concatenate([-t[..., d2:], t[..., :d2]], axis=-1)

        c = cos[None, None]
        s = sin[None, None]
        q = q * c + rot_half(q) * s
        k = k * c + rot_half(k) * s

        scores = jnp.einsum("bhqd,bhkd->bhqk", q, k) / math.sqrt(HEAD_DIM)
        scores = scores + mask[None, None]
        attn = jax.nn.softmax(scores, axis=-1)
        out = jnp.einsum("bhqk,bhkd->bhqd", attn, v)
        out = out.transpose(0, 2, 1, 3).reshape(bsz, seqlen, HIDDEN)
        return out @ wo + bo[0]


# ---------------------------------- main ---------------------------------------
if __name__ == "__main__":
    key = jax.random.PRNGKey(0)
    keys = jax.random.split(key, 9)

    x = jax.random.normal(keys[0], (B, S, DIM), dtype=jnp.float32)

    # Deterministic parameter init (Linear weights stored as (in, out)).
    def init_w(k, fan_in, fan_out):
        bound = 1.0 / math.sqrt(fan_in)
        return jax.random.uniform(k, (fan_in, fan_out), jnp.float32, -bound, bound)

    wq = init_w(keys[1], DIM, HIDDEN)
    wk = init_w(keys[2], DIM, HIDDEN)
    wv = init_w(keys[3], DIM, HIDDEN)
    wo = init_w(keys[4], HIDDEN, DIM)
    bq = jax.random.uniform(keys[5], (1, HIDDEN), jnp.float32, -0.1, 0.1)
    bk = jax.random.uniform(keys[6], (1, HIDDEN), jnp.float32, -0.1, 0.1)
    bv = jax.random.uniform(keys[7], (1, HIDDEN), jnp.float32, -0.1, 0.1)
    bo = jax.random.uniform(keys[8], (1, DIM), jnp.float32, -0.1, 0.1)

    # Rotary tables (standard inverse-frequency construction).
    pos = jnp.arange(S, dtype=jnp.float32)[:, None]                      # (S, 1)
    inv_freq = 1.0 / (10000.0 ** (jnp.arange(0, HEAD_DIM, 2, dtype=jnp.float32) / HEAD_DIM))
    angles = pos * inv_freq[None, :]                                     # (S, HEAD_DIM//2)
    cos = jnp.concatenate([jnp.cos(angles), jnp.cos(angles)], axis=-1)   # (S, HEAD_DIM)
    sin = jnp.concatenate([jnp.sin(angles), jnp.sin(angles)], axis=-1)   # (S, HEAD_DIM)

    # Additive causal mask.
    causal = jnp.tril(jnp.ones((S, S), dtype=jnp.float32))
    mask = jnp.where(causal == 1.0, 0.0, NEG).astype(jnp.float32)

    # TODO(synk): kvcache.update() path (inference-time cache) and
    # return_attn=True are not implemented; this matches kvcache=None forward.

    # One-time prep (fused weights, RoPE matrix, packed cos/sin, packed mask).
    params = prepare_attention_params(wq, bq, wk, bk, wv, bv, wo, bo, cos, sin, mask)

    y = attention_forward(x, *params)
    y = jax.block_until_ready(y)

    y_ref = attention_reference(x, cos, sin, mask, wq, bq, wk, bk, wv, bv, wo, bo)
    # Exact softmax normalization in-kernel; typically matches to ~1e-5.
    assert jnp.allclose(y, y_ref, atol=1e-3, rtol=1e-3), "mismatch vs reference"

    print("KERNEL_OK")
</pallas_src>

<mosaic_0001>
module attributes {stable_mosaic.version = 11 : i64} {
  func.func @attention_kernel(%arg0: memref<16x32xf32, #tpu.memory_space<vmem>>, %arg1: memref<32x96xf32, #tpu.memory_space<vmem>>, %arg2: memref<1x96xf32, #tpu.memory_space<vmem>>, %arg3: memref<16x16xf32, #tpu.memory_space<vmem>>, %arg4: memref<64x16xf32, #tpu.memory_space<vmem>>, %arg5: memref<64x16xf32, #tpu.memory_space<vmem>>, %arg6: memref<64x64xf32, #tpu.memory_space<vmem>>, %arg7: memref<32x32xf32, #tpu.memory_space<vmem>>, %arg8: memref<1x32xf32, #tpu.memory_space<vmem>>, %arg9: memref<16x32xf32, #tpu.memory_space<vmem>>) attributes {dimension_semantics = [], scalar_prefetch = 0 : i64, scratch_operands = 0 : i64, tpu.core_type = #tpu.core_type<tc>} {
    %c0 = arith.constant 0 : index
    %c0_0 = arith.constant 0 : index
    %0 = vector.load %arg0[%c0, %c0_0] : memref<16x32xf32, #tpu.memory_space<vmem>>, vector<16x32xf32>
    %c0_1 = arith.constant 0 : index
    %c0_2 = arith.constant 0 : index
    %1 = vector.load %arg1[%c0_1, %c0_2] : memref<32x96xf32, #tpu.memory_space<vmem>>, vector<32x96xf32>
    %cst = arith.constant dense<0.000000e+00> : vector<16x96xf32>
    %2 = tpu.matmul %0, %1, %cst {dimension_numbers = #tpu.dot_dimension_numbers<[1], [0], [0], [1], [0, 0, 1, 1], [], []>} : vector<16x32xf32>, vector<32x96xf32>, vector<16x96xf32> -> vector<16x96xf32>
    %c0_3 = arith.constant 0 : index
    %c0_4 = arith.constant 0 : index
    %3 = vector.load %arg2[%c0_3, %c0_4] : memref<1x96xf32, #tpu.memory_space<vmem>>, vector<1x96xf32>
    %4 = vector.broadcast %3 : vector<1x96xf32> to vector<16x96xf32>
    %5 = arith.addf %2, %4 : vector<16x96xf32>
    %6 = vector.extract_strided_slice %5 {offsets = [0, 0], sizes = [16, 24], strides = [1, 1]} : vector<16x96xf32> to vector<16x24xf32>
    %7 = vector.shape_cast %6 : vector<16x24xf32> to vector<2x1x8x24xf32>
    %8 = vector.extract_strided_slice %5 {offsets = [0, 24], sizes = [16, 24], strides = [1, 1]} : vector<16x96xf32> to vector<16x24xf32>
    %9 = vector.shape_cast %8 : vector<16x24xf32> to vector<2x1x8x24xf32>
    %10 = vector.extract_strided_slice %5 {offsets = [0, 48], sizes = [16, 24], strides = [1, 1]} : vector<16x96xf32> to vector<16x24xf32>
    %11 = vector.shape_cast %10 : vector<16x24xf32> to vector<2x1x8x24xf32>
    %12 = vector.extract_strided_slice %5 {offsets = [0, 72], sizes = [16, 24], strides = [1, 1]} : vector<16x96xf32> to vector<16x24xf32>
    %13 = vector.shape_cast %12 : vector<16x24xf32> to vector<2x1x8x24xf32>
    %14 = tpu.concatenate %7, %9, %11, %13 in 1 : vector<2x1x8x24xf32>, vector<2x1x8x24xf32>, vector<2x1x8x24xf32>, vector<2x1x8x24xf32> -> vector<2x4x8x24xf32>
    %15 = vector.shape_cast %14 : vector<2x4x8x24xf32> to vector<64x24xf32>
    %16 = vector.extract_strided_slice %15 {offsets = [0, 0], sizes = [64, 16], strides = [1, 1]} : vector<64x24xf32> to vector<64x16xf32>
    %17 = vector.extract_strided_slice %15 {offsets = [0, 16], sizes = [64, 8], strides = [1, 1]} : vector<64x24xf32> to vector<64x8xf32>
    %c0_5 = arith.constant 0 : index
    %c0_6 = arith.constant 0 : index
    %18 = vector.load %arg3[%c0_5, %c0_6] : memref<16x16xf32, #tpu.memory_space<vmem>>, vector<16x16xf32>
    %cst_7 = arith.constant dense<0.000000e+00> : vector<64x16xf32>
    %19 = tpu.matmul %16, %18, %cst_7 {dimension_numbers = #tpu.dot_dimension_numbers<[1], [0], [0], [1], [0, 0, 1, 1], [], []>} : vector<64x16xf32>, vector<16x16xf32>, vector<64x16xf32> -> vector<64x16xf32>
    %c0_8 = arith.constant 0 : index
    %c0_9 = arith.constant 0 : index
    %20 = vector.load %arg4[%c0_8, %c0_9] : memref<64x16xf32, #tpu.memory_space<vmem>>, vector<64x16xf32>
    %21 = arith.mulf %16, %20 : vector<64x16xf32>
    %c0_10 = arith.constant 0 : index
    %c0_11 = arith.constant 0 : index
    %22 = vector.load %arg5[%c0_10, %c0_11] : memref<64x16xf32, #tpu.memory_space<vmem>>, vector<64x16xf32>
    %23 = arith.mulf %19, %22 : vector<64x16xf32>
    %24 = arith.addf %21, %23 : vector<64x16xf32>
    %25 = vector.extract_strided_slice %24 {offsets = [0, 0], sizes = [64, 8], strides = [1, 1]} : vector<64x16xf32> to vector<64x8xf32>
    %26 = vector.extract_strided_slice %24 {offsets = [0, 8], sizes = [64, 8], strides = [1, 1]} : vector<64x16xf32> to vector<64x8xf32>
    "tpu.trace_start"() <{level = 10 : i32, message = "qd,kd->qk"}> : () -> ()
    %cst_12 = arith.constant dense<0.000000e+00> : vector<64x64xf32>
    %27 = tpu.matmul %25, %26, %cst_12 {dimension_numbers = #tpu.dot_dimension_numbers<[1], [1], [0], [0], [0, 0, 1, 0], [], []>} : vector<64x8xf32>, vector<64x8xf32>, vector<64x64xf32> -> vector<64x64xf32>
    "tpu.trace_stop"() : () -> ()
    %c0_13 = arith.constant 0 : index
    %c0_14 = arith.constant 0 : index
    %28 = vector.load %arg6[%c0_13, %c0_14] : memref<64x64xf32, #tpu.memory_space<vmem>>, vector<64x64xf32>
    %29 = arith.addf %27, %28 : vector<64x64xf32>
    %cst_15 = arith.constant dense<0xFF800000> : vector<64xf32>
    %30 = vector.multi_reduction <maximumf>, %29, %cst_15 [1] : vector<64x64xf32> to vector<64xf32>
    %31 = vector.shape_cast %30 : vector<64xf32> to vector<64x1xf32>
    %32 = vector.broadcast %31 : vector<64x1xf32> to vector<64x64xf32>
    %33 = arith.subf %29, %32 : vector<64x64xf32>
    %34 = math.exp %33 : vector<64x64xf32>
    %cst_16 = arith.constant dense<0.000000e+00> : vector<64xf32>
    %35 = vector.multi_reduction <add>, %34, %cst_16 [1] : vector<64x64xf32> to vector<64xf32>
    %36 = vector.shape_cast %35 : vector<64xf32> to vector<64x1xf32>
    %37 = vector.broadcast %36 : vector<64x1xf32> to vector<64x64xf32>
    %38 = arith.divf %34, %37 : vector<64x64xf32>
    %cst_17 = arith.constant dense<0.000000e+00> : vector<64x8xf32>
    %39 = tpu.matmul %38, %17, %cst_17 {dimension_numbers = #tpu.dot_dimension_numbers<[1], [0], [0], [1], [0, 0, 1, 1], [], []>} : vector<64x64xf32>, vector<64x8xf32>, vector<64x8xf32> -> vector<64x8xf32>
    %40 = vector.shape_cast %39 : vector<64x8xf32> to vector<2x4x8x8xf32>
    %c0_18 = arith.constant 0 : index
    %c0_19 = arith.constant 0 : index
    %41 = vector.load %arg7[%c0_18, %c0_19] : memref<32x32xf32, #tpu.memory_space<vmem>>, vector<32x32xf32>
    %cst_20 = arith.constant 0.000000e+00 : f32
    %42 = vector.broadcast %cst_20 : f32 to vector<16x32xf32>
    %43 = vector.extract_strided_slice %40 {offsets = [0, 0, 0, 0], sizes = [2, 1, 8, 8], strides = [1, 1, 1, 1]} : vector<2x4x8x8xf32> to vector<2x1x8x8xf32>
    %44 = vector.shape_cast %43 : vector<2x1x8x8xf32> to vector<2x8x8xf32>
    %45 = vector.shape_cast %44 : vector<2x8x8xf32> to vector<16x8xf32>
    %46 = vector.extract_strided_slice %41 {offsets = [0, 0], sizes = [8, 32], strides = [1, 1]} : vector<32x32xf32> to vector<8x32xf32>
    %cst_21 = arith.constant dense<0.000000e+00> : vector<16x32xf32>
    %47 = tpu.matmul %45, %46, %cst_21 {dimension_numbers = #tpu.dot_dimension_numbers<[1], [0], [0], [1], [0, 0, 1, 1], [], []>} : vector<16x8xf32>, vector<8x32xf32>, vector<16x32xf32> -> vector<16x32xf32>
    %48 = arith.addf %42, %47 : vector<16x32xf32>
    %49 = vector.extract_strided_slice %40 {offsets = [0, 1, 0, 0], sizes = [2, 1, 8, 8], strides = [1, 1, 1, 1]} : vector<2x4x8x8xf32> to vector<2x1x8x8xf32>
    %50 = vector.shape_cast %49 : vector<2x1x8x8xf32> to vector<2x8x8xf32>
    %51 = vector.shape_cast %50 : vector<2x8x8xf32> to vector<16x8xf32>
    %52 = vector.extract_strided_slice %41 {offsets = [8, 0], sizes = [8, 32], strides = [1, 1]} : vector<32x32xf32> to vector<8x32xf32>
    %cst_22 = arith.constant dense<0.000000e+00> : vector<16x32xf32>
    %53 = tpu.matmul %51, %52, %cst_22 {dimension_numbers = #tpu.dot_dimension_numbers<[1], [0], [0], [1], [0, 0, 1, 1], [], []>} : vector<16x8xf32>, vector<8x32xf32>, vector<16x32xf32> -> vector<16x32xf32>
    %54 = arith.addf %48, %53 : vector<16x32xf32>
    %55 = vector.extract_strided_slice %40 {offsets = [0, 2, 0, 0], sizes = [2, 1, 8, 8], strides = [1, 1, 1, 1]} : vector<2x4x8x8xf32> to vector<2x1x8x8xf32>
    %56 = vector.shape_cast %55 : vector<2x1x8x8xf32> to vector<2x8x8xf32>
    %57 = vector.shape_cast %56 : vector<2x8x8xf32> to vector<16x8xf32>
    %58 = vector.extract_strided_slice %41 {offsets = [16, 0], sizes = [8, 32], strides = [1, 1]} : vector<32x32xf32> to vector<8x32xf32>
    %cst_23 = arith.constant dense<0.000000e+00> : vector<16x32xf32>
    %59 = tpu.matmul %57, %58, %cst_23 {dimension_numbers = #tpu.dot_dimension_numbers<[1], [0], [0], [1], [0, 0, 1, 1], [], []>} : vector<16x8xf32>, vector<8x32xf32>, vector<16x32xf32> -> vector<16x32xf32>
    %60 = arith.addf %54, %59 : vector<16x32xf32>
    %61 = vector.extract_strided_slice %40 {offsets = [0, 3, 0, 0], sizes = [2, 1, 8, 8], strides = [1, 1, 1, 1]} : vector<2x4x8x8xf32> to vector<2x1x8x8xf32>
    %62 = vector.shape_cast %61 : vector<2x1x8x8xf32> to vector<2x8x8xf32>
    %63 = vector.shape_cast %62 : vector<2x8x8xf32> to vector<16x8xf32>
    %64 = vector.extract_strided_slice %41 {offsets = [24, 0], sizes = [8, 32], strides = [1, 1]} : vector<32x32xf32> to vector<8x32xf32>
    %cst_24 = arith.constant dense<0.000000e+00> : vector<16x32xf32>
    %65 = tpu.matmul %63, %64, %cst_24 {dimension_numbers = #tpu.dot_dimension_numbers<[1], [0], [0], [1], [0, 0, 1, 1], [], []>} : vector<16x8xf32>, vector<8x32xf32>, vector<16x32xf32> -> vector<16x32xf32>
    %66 = arith.addf %60, %65 : vector<16x32xf32>
    %c0_25 = arith.constant 0 : index
    %c0_26 = arith.constant 0 : index
    %67 = vector.load %arg8[%c0_25, %c0_26] : memref<1x32xf32, #tpu.memory_space<vmem>>, vector<1x32xf32>
    %68 = vector.broadcast %67 : vector<1x32xf32> to vector<16x32xf32>
    %69 = arith.addf %66, %68 : vector<16x32xf32>
    %c0_27 = arith.constant 0 : index
    %c0_28 = arith.constant 0 : index
    %70 = vector.load %arg9[%c0_27, %c0_28] : memref<16x32xf32, #tpu.memory_space<vmem>>, vector<16x32xf32>
    tpu.vector_store %arg9[%c0_27, %c0_28], %69 {strides = array<i32>} : memref<16x32xf32, #tpu.memory_space<vmem>>, vector<16x32xf32>,
    return
  }
}

</mosaic_0001>

<bundles_post_ra>
// kernel: attention_forward.1
= control target key start
LH: loop header
LB: loop body
LE: loop exit
PB: predicated region body
PF: predicated region fallthrough
CT: control target
= control target key end

     0   :  { %14 = vsyncpa [#allocation3], 0  ;;  %s1848_s0 = inlined_call_operand.vmem [shape: f32[16,32], index: 0, kind: input, shape index: {}]   ;;  %s1849_s1 = inlined_call_operand.vmem [shape: f32[32,96], index: 1, kind: input, shape index: {}]   ;;  %s1850_s2 = inlined_call_operand.vmem [shape: f32[1,96], index: 2, kind: input, shape index: {}]   ;;  %s1851_s3 = inlined_call_operand.hbm [shape: f32[16,16], index: 3, kind: input, shape index: {}]   ;;  %s1852_s4 = inlined_call_operand.vmem [shape: f32[64,16], index: 4, kind: input, shape index: {}]   ;;  %s1853_s5 = inlined_call_operand.vmem [shape: f32[64,16], index: 5, kind: input, shape index: {}]   ;;  %s1854_s6 = inlined_call_operand.vmem [shape: f32[64,64], index: 6, kind: input, shape index: {}]   ;;  %s1855_s7 = inlined_call_operand.vmem [shape: f32[32,32], index: 7, kind: input, shape index: {}]   ;;  %s1856_s8 = inlined_call_operand.vmem [shape: f32[1,32], index: 8, kind: input, shape index: {}]   ;;  %s1857_s9 = inlined_call_operand.hbm [shape: f32[16,32], index: 9, kind: output, shape index: {}]  }
   0x1   :  { %15 = vsyncpa [#allocation4], 0  ;;  %s1492_s30 = smov [#allocation2]   ;;  %s1444_s13 = scalar_lea.hbm %s1851_s3, 256 }
   0x2   :  { %s27_s10 = sshll.u32 %s1492_s30, 4  ;;  %p1445_p0 = scmp.ne.s32.totalorder %s1851_s3, %s1444_s13  ;;  %s28_s10 = int_to_ptr.vmem [resolvable:$true] %s27_s10 }
   0x3   :  { %p1448_p1 = scmp.lt.u32.totalorder %s1444_s13, %s1851_s3 }
   0x5   :  { %p1450_p2 = pnand %p1448_p1, %p1445_p0 }
   0x7   :  { %1453 = shalt.err (!%p1450_p2)
}
   0x8   :  { %s1454_s18 = scalar_lea.vmem %s28_s10, 256  ;;  %p1459_p4 = scmp.lt.s32.totalorder %s28_s10, %s28_s10 }
   0x9   :  { %p1455_p3 = scmp.ne.s32.totalorder %s28_s10, %s1454_s18  ;;  %p1460_p5 = scmp.lt.s32.totalorder %s1454_s18, %s1454_s18 }
   0xb   :  { %p1461_p6 = por %p1460_p5, %p1459_p4 }
   0xd   :  { %p1462_p7 = pnand %p1461_p6, %p1455_p3 }
   0xf   :  { %1465 = shalt.err (!%p1462_p7)
}
  0x10   :  { %s1493_s19 = smov 128   ;;  %s1494_s20 = smov 8  }
  0x11   :  { %33 = dma.hbm_to_vmem [thread:$0]  %s1851_s3, 256, %s28_s10, [#allocation3], %s1493_s19, %s1493_s19, %s1494_s20  }
  0x12   :  { %1488 = dma.done.wait [#allocation3], 256  }
  0x13   :  { %1489 = vsyncadd [#allocation3], 4294967040  ;;  %vm60_vm0 = vcmask 261120   ;;  %v49_v0 = vld [vmem:[%s1849_s1] sm:$0xff]  ;;  %v50_v1 = vld [vmem:[%s1849_s1 + $0x8] sm:$0xff]  ;;  %vm164_vm1 = vcmask 130048  }
  0x14   :  { %v51_v2 = vld [vmem:[%s1849_s1 + $0x10] sm:$0xff]  ;;  %v1305_v3 = vpack.c.bf16 %v50_v1, %v49_v0  ;;  %v52_v4 = vld [vmem:[%s1849_s1 + $0x18] sm:$0xff]  ;;  %v47_v5 = vld [vmem:[%s1848_s0] sm:$0xff]  ;;  %s1495_s14 = smov 56   ;;  %s1497_s15 = smov 80   ;;  %vm358_vm2 = vcmask 64512  }
  0x15   :  { %v1309_v6 = vpack.c.bf16 %v52_v4, %v51_v2  ;;  %1210 = vmatprep.mubr.msk.f32.mxu0 %vm60_vm0, %v47_v5  ;;  %v48_v7 = vld [vmem:[%s1848_s0 + $0x8] sm:$0xff]  ;;  %v162_v8 = vld [vmem:[#allocation2] sm:$0xff]  ;;  %s1496_s0 = smov 104   ;;  %v289_v33 = vld [vmem:[%s1852_s4 + $0x18] sm:$0xff]  ;;  %vm496_vm4 = vcmask 523264  }
  0x16   :  { %1306 = vmatprep.subr.bf16.mxu0 %v1305_v3  ;;  %v163_v9 = vld [vmem:[#allocation2 + $0x8] sm:$0xff]  ;;  %v1098_v11 = vld [vmem:[%s1850_s2] ss:$0 sm:$0xff]  ;;  %v305_v35 = vld [vmem:[%s1853_s5 + $0x18] sm:$0xff] }
  0x17   :  { %1308 = vmatpush3.bf16.msra.mxu0 %v1305_v3  ;;  %v1313_v10 = vpack.c.bf16 %v163_v9, %v162_v8  ;;  %v287_v23 = vld [vmem:[%s1852_s4 + $0x8] sm:$0xff]  ;;  %v286_v25 = vld [vmem:[%s1852_s4] sm:$0xff]  ;;  %v288_v36 = vld [vmem:[%s1852_s4 + $0x10] sm:$0xff] }
  0x18   :  { %1310 = vmatprep.subr.bf16.mxu0 %v1309_v6  ;;  %v303_v24 = vld [vmem:[%s1853_s5 + $0x8] sm:$0xff]  ;;  %v302_v26 = vld [vmem:[%s1853_s5] sm:$0xff]  ;;  %v304_v38 = vld [vmem:[%s1853_s5 + $0x10] sm:$0xff] }
  0x19   :  { %1314 = vmatprep.subr.bf16.mxu1 %v1313_v10  ;;  %v291_v44 = vld [vmem:[%s1852_s4 + $0x28] sm:$0xff]  ;;  %v290_v49 = vld [vmem:[%s1852_s4 + $0x20] sm:$0xff]  ;;  %v293_v56 = vld [vmem:[%s1852_s4 + $0x38] sm:$0xff] }
  0x1a   :  { %1316 = vmatpush3.bf16.msra.mxu1 %v1313_v10  ;;  %v307_v47 = vld [vmem:[%s1853_s5 + $0x28] sm:$0xff]  ;;  %v306_v50 = vld [vmem:[%s1853_s5 + $0x20] sm:$0xff]  ;;  %v309_v60 = vld [vmem:[%s1853_s5 + $0x38] sm:$0xff] }
  0x1b   :  { %1312 = vmatpush3.bf16.msra.mxu0 %v1309_v6  ;;  %v292_v61 = vld [vmem:[%s1852_s4 + $0x30] sm:$0xff]  ;;  %vm1691_vm3 = vmpackc.low %vm358_vm2, %vm358_vm2 }
  0x1c   :  { %v308_v63 = vld [vmem:[%s1853_s5 + $0x30] sm:$0xff] }
  0x1e   :  { %1211 = vmatmul.mubr.msk.f32.vlgmr.msra.gmra.mrb[0].mxu0 %vm60_vm0, %v48_v7 }
  0xf1   :  { %v1212_v12 = vpop.f32.mrb[0].mxu0 }
  0xf2   :  { %v133_v13 = vpop.f32.mrb[1].mxu0  ;;  %v1595_v15 = vadd.f32 %v1212_v12, %v1098_v11 }
  0xf3   :  { %v1589_v14 = vadd.f32 %v1098_v11, %v133_v13 }
  0xf4   :  { %v298_v57 = vmul.f32 %v290_v49, %v1595_v15 }
  0xf5   :  { %156 = vrot.lane.b32.xlu1 %v1589_v14, %s1495_s14  ;;  %144 = vrot.lane.b32.xlu0 %v1589_v14, %s1496_s0  ;;  %v294_v31 = vmul.f32 %v286_v25, %v1589_v14 }
  0xf6   :  { %1217 = vmatprep.mubr.msk.f32.mxu1 %vm164_vm1, %v1589_v14 }
  0xf9   :  { %146 = vrot.lane.b32.xlu1 %v1595_v15, %s1496_s0  ;;  %150 = vrot.lane.b32.xlu0 %v1589_v14, %s1497_s15 }
  0xfd   :  { %158 = vrot.lane.b32.xlu1 %v1595_v15, %s1495_s14  ;;  %152 = vrot.lane.b32.xlu0 %v1595_v15, %s1497_s15  ;;  %s1498_s14 = smov 120   ;;  %s1499_s15 = smov 112  }
 0x167   :  { %v1601_v16 = vpop.permute.xlu0 %144  ;;  %v1603_v17 = vpop.permute.xlu1 %156 }
 0x168   :  { %1218 = vmatmul.mubr.msk.f32.vlgmr.msra.gmra.mrb[0].mxu1 %vm164_vm1, %v1601_v16  ;;  %v295_v28 = vmul.f32 %v287_v23, %v1601_v16  ;;  %v297_v40 = vmul.f32 %v289_v33, %v1603_v17 }
 0x16b   :  { %v1607_v18 = vpop.permute.xlu0 %150  ;;  %v1615_v20 = vpop.permute.xlu1 %146 }
 0x16c   :  { %v1397_v19 = vpack.i.bf16 %v1603_v17, %v1607_v18  ;;  %1220 = vmatprep.mubr.msk.f32.mxu1 %vm164_vm1, %v1607_v18  ;;  %v296_v45 = vmul.f32 %v288_v36, %v1607_v18  ;;  %v299_v53 = vmul.f32 %v291_v44, %v1615_v20  ;;  %v328_v44 = vld [vmem:[%s1854_s6 + $0x10] sm:$0xff] }
 0x16d   :  { %1221 = vmatmul.mubr.msk.f32.gmra.mrb[2].mxu1 %vm164_vm1, %v1603_v17 }
 0x16e   :  { %1223 = vmatprep.mubr.msk.f32.mxu1 %vm164_vm1, %v1595_v15 }
 0x16f   :  { %v1619_v21 = vpop.permute.xlu0 %152  ;;  %v1625_v22 = vpop.permute.xlu1 %158 }
 0x170   :  { %v301_v2 = vmul.f32 %v293_v56, %v1625_v22  ;;  %v300_v5 = vmul.f32 %v292_v61, %v1619_v21  ;;  %v333_v61 = vld [vmem:[%s1854_s6 + $0x38] sm:$0xff]  ;;  %v1407_v17 = vpack.i.bf16 %v1625_v22, %v1619_v21 }
 0x171   :  { %1224 = vmatmul.mubr.msk.f32.gmra.mrb[4].mxu1 %vm164_vm1, %v1615_v20 }
 0x172   :  { %1226 = vmatprep.mubr.msk.f32.mxu1 %vm164_vm1, %v1619_v21 }
 0x175   :  { %1227 = vmatmul.mubr.msk.f32.gmra.mrb[6].mxu1 %vm164_vm1, %v1625_v22 }
 0x23b   :  { %v1219_v27 = vpop.f32.mrb[0].mxu1 }
 0x23c   :  { %v311_v29 = vmul.f32 %v1219_v27, %v303_v24  ;;  %v247_v30 = vpop.f32.mrb[1].mxu1 }
 0x23d   :  { %v310_v32 = vmul.f32 %v302_v26, %v247_v30 }
 0x23e   :  { %v1646_v34 = vadd.f32 %v311_v29, %v295_v28 }
 0x23f   :  { %v318_v37 = vadd.f32 %v310_v32, %v294_v31 }
 0x240   :  { %v1222_v39 = vpop.f32.mrb[2].mxu1 }
 0x241   :  { %v313_v41 = vmul.f32 %v1222_v39, %v305_v35  ;;  %v257_v42 = vpop.f32.mrb[3].mxu1  ;;  %1245 = vmatprep.mubr.msk.f32.mxu1 %vm358_vm2, %v318_v37  ;;  %v1372_v43 = vpack.i.bf16 %v1646_v34, %v318_v37 }
 0x242   :  { %v312_v46 = vmul.f32 %v304_v38, %v257_v42  ;;  %v327_v38 = vld [vmem:[%s1854_s6 + $0x8] sm:$0xff] }
 0x243   :  { %v321_v48 = vadd.f32 %v313_v41, %v297_v40  ;;  %1373 = vrot.lane.b32.xlu0 %v1372_v43, %s1498_s14 }
 0x244   :  { %v320_v51 = vadd.f32 %v312_v46, %v296_v45  ;;  %v1225_v52 = vpop.f32.mrb[4].mxu1 }
 0x245   :  { %v315_v54 = vmul.f32 %v1225_v52, %v307_v47  ;;  %v267_v55 = vpop.f32.mrb[5].mxu1  ;;  %v329_v47 = vld [vmem:[%s1854_s6 + $0x18] sm:$0xff] }
 0x246   :  { %v314_v58 = vmul.f32 %v306_v50, %v267_v55  ;;  %v1377_v59 = vpack.i.bf16 %v321_v48, %v320_v51  ;;  %v330_v50 = vld [vmem:[%s1854_s6 + $0x20] sm:$0xff] }
 0x247   :  { %v323_v62 = vadd.f32 %v315_v54, %v299_v53  ;;  %v331_v54 = vld [vmem:[%s1854_s6 + $0x28] sm:$0xff] }
 0x248   :  { %v322_v0 = vadd.f32 %v314_v58, %v298_v57  ;;  %1378 = vrot.lane.b32.xlu1 %v1377_v59, %s1498_s14  ;;  %v1228_v1 = vpop.f32.mrb[6].mxu1 }
 0x249   :  { %v317_v3 = vmul.f32 %v1228_v1, %v309_v60  ;;  %v277_v4 = vpop.f32.mrb[7].mxu1 }
 0x24a   :  { %v316_v6 = vmul.f32 %v308_v63, %v277_v4  ;;  %v1382_v7 = vpack.i.bf16 %v323_v62, %v322_v0 }
 0x24b   :  { %v325_v8 = vadd.f32 %v317_v3, %v301_v2  ;;  %v1392_v2 = vpack.i.bf16 %v1601_v16, %v1589_v14  ;;  %v332_v3 = vld [vmem:[%s1854_s6 + $0x30] sm:$0xff] }
 0x24c   :  { %v324_v9 = vadd.f32 %v316_v6, %v300_v5  ;;  %1383 = vrot.lane.b32.xlu0 %v1382_v7, %s1498_s14 }
 0x24e   :  { %v1387_v10 = vpack.i.bf16 %v325_v8, %v324_v9 }
 0x250   :  { %1388 = vrot.lane.b32.xlu1 %v1387_v10, %s1498_s14 }
 0x2b5   :  { %v1374_v11 = vpop.permute.xlu0 %1373 }
 0x2b6   :  { %v1376_v12 = vunpack.i.h.bf16 %v1374_v11  ;;  %v1375_v13 = vunpack.i.l.bf16 %v1374_v11 }
 0x2b8   :  { %v1317_v24 = vpack.c.bf16 %v1376_v12, %v1375_v13 }
 0x2ba   :  { %1319 = vmatprep.subr.msk.bf16.mxu1 %vm1691_vm3, %v1317_v24  ;;  %v1379_v25 = vpop.permute.xlu1 %1378 }
 0x2bb   :  { %v1381_v26 = vunpack.i.h.bf16 %v1379_v25  ;;  %v1380_v27 = vunpack.i.l.bf16 %v1379_v25  ;;  %1322 = vmatpush3.bf16.xpose.msk.msra.mxu1 %vm1691_vm3, %v1317_v24 }
 0x2bd   :  { %v1323_v28 = vpack.c.bf16 %v1381_v26, %v1380_v27 }
 0x2be   :  { %v1384_v29 = vpop.permute.xlu0 %1383 }
 0x2bf   :  { %v1386_v30 = vunpack.i.h.bf16 %v1384_v29  ;;  %v1385_v31 = vunpack.i.l.bf16 %v1384_v29  ;;  %1325 = vmatprep.subr.msk.bf16.mxu1 %vm1691_vm3, %v1323_v28 }
 0x2c1   :  { %v1329_v32 = vpack.c.bf16 %v1386_v30, %v1385_v31 }
 0x2c2   :  { %v1389_v33 = vpop.permute.xlu1 %1388 }
 0x2c3   :  { %1328 = vmatpush3.bf16.xpose.msk.msra.mxu1 %vm1691_vm3, %v1323_v28  ;;  %v1391_v35 = vunpack.i.h.bf16 %v1389_v33  ;;  %v1390_v36 = vunpack.i.l.bf16 %v1389_v33 }
 0x2c4   :  { %1331 = vmatprep.subr.msk.bf16.mxu1 %vm1691_vm3, %v1329_v32 }
 0x2c5   :  { %v1335_v37 = vpack.c.bf16 %v1391_v35, %v1390_v36 }
 0x2cb   :  { %1334 = vmatpush3.bf16.xpose.msk.msra.mxu1 %vm1691_vm3, %v1329_v32 }
 0x2cc   :  { %1337 = vmatprep.subr.msk.bf16.mxu1 %vm1691_vm3, %v1335_v37 }
 0x2d3   :  { %1340 = vmatpush3.bf16.xpose.msk.msra.mxu1 %vm1691_vm3, %v1335_v37 }
 0x2da   :  { %1246 = vmatmul.mubr.msk.f32.vlgmr.msra.gmra.mrb[8].mxu1 %vm358_vm2, %v1646_v34  ;;  %v326_v34 = vld [vmem:[%s1854_s6] sm:$0xff] }
 0x2db   :  { %1248 = vmatprep.mubr.msk.f32.mxu1 %vm358_vm2, %v320_v51 }
 0x2de   :  { %1249 = vmatmul.mubr.msk.f32.gmra.mrb[10].mxu1 %vm358_vm2, %v321_v48 }
 0x2df   :  { %1251 = vmatprep.mubr.msk.f32.mxu1 %vm358_vm2, %v322_v0 }
 0x2e2   :  { %1252 = vmatmul.mubr.msk.f32.gmra.mrb[12].mxu1 %vm358_vm2, %v323_v62 }
 0x2e3   :  { %1254 = vmatprep.mubr.msk.f32.mxu1 %vm358_vm2, %v324_v9 }
 0x2e6   :  { %1255 = vmatmul.mubr.msk.f32.gmra.mrb[14].mxu1 %vm358_vm2, %v325_v8 }
 0x3ad   :  { %v1247_v39 = vpop.f32.mrb[8].mxu1 }
 0x3ae   :  { %v463_v40 = vadd.f32 %v1247_v39, %v327_v38  ;;  %v457_v41 = vpop.f32.mrb[9].mxu1 }
 0x3af   :  { %v458_v42 = vadd.f32 %v457_v41, %v326_v34 }
 0x3b0   :  { %v500_v43 = vsel %vm496_vm4, %v463_v40, -inf }
 0x3b1   :  { %501 = vmax.xlane.f32.xlu1 %v500_v43  ;;  %v1250_v45 = vpop.f32.mrb[10].mxu1  ;;  %v497_v46 = vsel %vm496_vm4, %v458_v42, -inf  ;;  %v1402_v43 = vpack.i.bf16 %v1615_v20, %v1595_v15 }
 0x3b2   :  { %v467_v48 = vpop.f32.mrb[11].mxu1  ;;  %498 = vmax.xlane.f32.xlu0 %v497_v46  ;;  %v473_v51 = vadd.f32 %v1250_v45, %v329_v47 }
 0x3b3   :  { %v468_v49 = vadd.f32 %v467_v48, %v328_v44 }
 0x3b4   :  { %v506_v60 = vsel %vm496_vm4, %v473_v51, -inf }
 0x3b5   :  { %v1253_v52 = vpop.f32.mrb[12].mxu1  ;;  %v503_v53 = vsel %vm496_vm4, %v468_v49, -inf }
 0x3b6   :  { %v477_v55 = vpop.f32.mrb[13].mxu1  ;;  %504 = vmax.xlane.f32.xlu0 %v503_v53  ;;  %v483_v57 = vadd.f32 %v1253_v52, %v331_v54 }
 0x3b7   :  { %v1740_v56 = vadd.f32 %v477_v55, %v330_v50 }
 0x3b8   :  { %v512_v0 = vsel %vm496_vm4, %v483_v57, -inf }
 0x3b9   :  { %v1256_v58 = vpop.f32.mrb[14].mxu1  ;;  %v509_v59 = vsel %vm496_vm4, %v1740_v56, -inf }
 0x3ba   :  { %v487_v62 = vpop.f32.mrb[15].mxu1  ;;  %510 = vmax.xlane.f32.xlu1 %v509_v59  ;;  %507 = vmax.xlane.f32.xlu0 %v506_v60  ;;  %v1748_v63 = vadd.f32 %v1256_v58, %v333_v61 }
 0x3bb   :  { %v488_v4 = vadd.f32 %v487_v62, %v332_v3 }
 0x3bc   :  { %v518_v1 = vsel %vm496_vm4, %v1748_v63, -inf }
 0x3bd   :  { %v515_v5 = vsel %vm496_vm4, %v488_v4, -inf }
 0x3be   :  { %513 = vmax.xlane.f32.xlu0 %v512_v0 }
 0x3c2   :  { %519 = vmax.xlane.f32.xlu0 %v518_v1 }
 0x3cb   :  { %1393 = vrot.lane.b32.xlu1 %v1392_v2, %s1499_s15 }
 0x3ef   :  { %516 = vmax.xlane.f32.xlu1 %v515_v5 }
 0x43e   :  { %v502_v6 = vpop.xlane.xlu1 %501 }
 0x43f   :  { %v522_v7 = vsub.f32 %v463_v40, %v502_v6  ;;  %v499_v8 = vpop.xlane.xlu0 %498 }
 0x440   :  { %v521_v9 = vsub.f32 %v458_v42, %v499_v8 }
 0x441   :  { %v531_v10 = vmul.f32 1.442695, %v522_v7 }
 0x442   :  { %v529_v11 = vmul.f32 1.442695, %v521_v9 }
 0x443   :  { %1412 = vpow2.f32 %v531_v10  ;;  %v505_v12 = vpop.xlane.xlu0 %504 }
 0x444   :  { %1414 = vpow2.f32 %v529_v11  ;;  %v523_v14 = vsub.f32 %v468_v49, %v505_v12 }
 0x446   :  { %v533_v16 = vmul.f32 1.442695, %v523_v14 }
 0x447   :  { %v511_v13 = vpop.xlane.xlu1 %510  ;;  %v508_v23 = vpop.xlane.xlu0 %507 }
 0x448   :  { %1416 = vpow2.f32 %v533_v16  ;;  %v524_v24 = vsub.f32 %v473_v51, %v508_v23  ;;  %v525_v44 = vsub.f32 %v1740_v56, %v511_v13 }
 0x44a   :  { %v535_v25 = vmul.f32 1.442695, %v524_v24  ;;  %v537_v45 = vmul.f32 1.442695, %v525_v44 }
 0x44b   :  { %v1394_v26 = vpop.permute.xlu1 %1393  ;;  %v514_v27 = vpop.xlane.xlu0 %513 }
 0x44c   :  { %v1396_v28 = vunpack.i.h.bf16 %v1394_v26  ;;  %v1395_v29 = vunpack.i.l.bf16 %v1394_v26  ;;  %v526_v30 = vsub.f32 %v483_v57, %v514_v27  ;;  %1418 = vpow2.f32 %v535_v25 }
 0x44d   :  { %v1760_v31 = vpop.eup %1412 }
 0x44e   :  { %v1415_v32 = vpop.eup %1414  ;;  %v1341_v33 = vpack.c.bf16 %v1396_v28, %v1395_v29  ;;  %v539_v35 = vmul.f32 1.442695, %v526_v30  ;;  %v548_v36 = vsel %vm496_vm4, %v1760_v31, 0.0 }
 0x44f   :  { %549 = vadd.xlane.f32.xlu0 %v548_v36  ;;  %v545_v37 = vsel %vm496_vm4, %v1415_v32, 0.0  ;;  %v520_v18 = vpop.xlane.xlu0 %519 }
 0x450   :  { %1420 = vpow2.f32 %v539_v35  ;;  %1342 = vmatprep.subr.bf16.mxu0 %v1341_v33  ;;  %546 = vadd.xlane.f32.xlu1 %v545_v37 }
 0x451   :  { %1344 = vmatpush3.bf16.msra.mxu0 %v1341_v33  ;;  %1422 = vpow2.f32 %v537_v45 }
 0x452   :  { %v1765_v38 = vpop.eup %1416 }
 0x453   :  { %v551_v34 = vsel %vm496_vm4, %v1765_v38, 0.0 }
 0x454   :  { %552 = vadd.xlane.f32.xlu1 %v551_v34  ;;  %v740_v34 = vld [vmem:[%s1855_s7 + $0x10] sm:$0xff] }
 0x456   :  { %v1769_v39 = vpop.eup %1418 }
 0x457   :  { %v554_v40 = vsel %vm496_vm4, %v1769_v39, 0.0 }
 0x458   :  { %555 = vadd.xlane.f32.xlu0 %v554_v40  ;;  %v741_v40 = vld [vmem:[%s1855_s7 + $0x18] sm:$0xff] }
 0x45a   :  { %v1773_v41 = vpop.eup %1420 }
 0x45b   :  { %v560_v42 = vsel %vm496_vm4, %v1773_v41, 0.0  ;;  %v1423_v49 = vpop.eup %1422 }
 0x45c   :  { %561 = vadd.xlane.f32.xlu0 %v560_v42  ;;  %v557_v50 = vsel %vm496_vm4, %v1423_v49, 0.0 }
 0x465   :  { %1403 = vrot.lane.b32.xlu1 %v1402_v43, %s1499_s15  ;;  %v1141_v43 = vld [vmem:[%s1856_s8] ss:$0 sm:$0xff] }
 0x472   :  { %1398 = vrot.lane.b32.xlu0 %v1397_v19, %s1499_s15  ;;  %v528_v19 = vsub.f32 %v1748_v63, %v520_v18 }
 0x474   :  { %v543_v51 = vmul.f32 1.442695, %v528_v19 }
 0x47c   :  { %v517_v46 = vpop.xlane.xlu1 %516 }
 0x47d   :  { %v527_v47 = vsub.f32 %v488_v4, %v517_v46 }
 0x47f   :  { %v541_v48 = vmul.f32 1.442695, %v527_v47 }
 0x481   :  { %1424 = vpow2.f32 %v541_v48 }
 0x482   :  { %1426 = vpow2.f32 %v543_v51 }
 0x489   :  { %558 = vadd.xlane.f32.xlu1 %v557_v50 }
 0x48b   :  { %v1786_v15 = vpop.eup %1424 }
 0x48c   :  { %v563_v20 = vsel %vm496_vm4, %v1786_v15, 0.0  ;;  %v1427_v52 = vpop.eup %1426 }
 0x48d   :  { %v566_v53 = vsel %vm496_vm4, %v1427_v52, 0.0 }
 0x491   :  { %564 = vadd.xlane.f32.xlu0 %v563_v20 }
 0x49a   :  { %1408 = vrot.lane.b32.xlu1 %v1407_v17, %s1499_s15 }
 0x4be   :  { %567 = vadd.xlane.f32.xlu1 %v566_v53 }
 0x4dc   :  { %v550_v55 = vpop.xlane.xlu0 %549 }
 0x4dd   :  { %v547_v54 = vpop.xlane.xlu1 %546 }
 0x4de   :  { %1428 = vrcp.f32 %v547_v54 }
 0x4df   :  { %1430 = vrcp.f32 %v550_v55 }
 0x4e1   :  { %v553_v56 = vpop.xlane.xlu1 %552 }
 0x4e2   :  { %1432 = vrcp.f32 %v553_v56 }
 0x4e5   :  { %v556_v57 = vpop.xlane.xlu0 %555  ;;  %v1404_v21 = vpop.permute.xlu1 %1403 }
 0x4e6   :  { %v1406_v61 = vunpack.i.h.bf16 %v1404_v21  ;;  %v1405_v62 = vunpack.i.l.bf16 %v1404_v21  ;;  %1434 = vrcp.f32 %v556_v57 }
 0x4e8   :  { %v1429_v58 = vpop.eup %1428  ;;  %v1349_v2 = vpack.c.bf16 %v1406_v61, %v1405_v62 }
 0x4e9   :  { %v570_v59 = vmul.f32 %v1429_v58, %v1415_v32  ;;  %v562_v60 = vpop.xlane.xlu0 %561  ;;  %v1431_v8 = vpop.eup %1430  ;;  %v738_v32 = vld [vmem:[%s1855_s7] sm:$0xff] }
 0x4ea   :  { %v572_v11 = vmul.f32 %v1431_v8, %v1760_v31  ;;  %v739_v31 = vld [vmem:[%s1855_s7 + $0x8] sm:$0xff]  ;;  %s1500_s7 = smov [#allocation5]  }
 0x4eb   :  { %1273 = vmatprep.mubr.msk.f32.mxu0 %vm496_vm4, %v570_v59  ;;  %s1086_s5 = sshll.u32 %s1500_s7, 4  ;;  %s1087_s5 = int_to_ptr.vmem [resolvable:$true] %s1086_s5 }
 0x4ec   :  { %v1433_v9 = vpop.eup %1432  ;;  %s1466_s27 = scalar_lea.vmem %s1087_s5, 256  ;;  %p1471_p9 = scmp.lt.s32.totalorder %s1087_s5, %s1087_s5 }
 0x4ed   :  { %v1399_v22 = vpop.permute.xlu0 %1398  ;;  %v574_v14 = vmul.f32 %v1433_v9, %v1765_v38  ;;  %p1467_p8 = scmp.ne.s32.totalorder %s1087_s5, %s1466_s27  ;;  %p1472_p10 = scmp.lt.s32.totalorder %s1466_s27, %s1466_s27 }
 0x4ee   :  { %v1401_v63 = vunpack.i.h.bf16 %v1399_v22  ;;  %v1400_v0 = vunpack.i.l.bf16 %v1399_v22 }
 0x4ef   :  { %p1473_p11 = por %p1472_p10, %p1471_p9 }
 0x4f0   :  { %v1345_v1 = vpack.c.bf16 %v1401_v63, %v1400_v0  ;;  %v1435_v12 = vpop.eup %1434 }
 0x4f1   :  { %v576_v13 = vmul.f32 %v1435_v12, %v1769_v39  ;;  %p1474_p12 = pnand %p1473_p11, %p1467_p8 }
 0x4f2   :  { %1346 = vmatprep.subr.bf16.mxu0 %v1345_v1 }
 0x4f3   :  { %1348 = vmatpush3.bf16.msra.mxu0 %v1345_v1 }
 0x4f4   :  { %1350 = vmatprep.subr.bf16.mxu0 %v1349_v2 }
 0x4f7   :  { %1352 = vmatpush3.bf16.msra.mxu0 %v1349_v2 }
 0x516   :  { %v559_v3 = vpop.xlane.xlu1 %558 }
 0x517   :  { %1436 = vrcp.f32 %v559_v3 }
 0x518   :  { %1438 = vrcp.f32 %v562_v60 }
 0x51a   :  { %v1409_v4 = vpop.permute.xlu1 %1408 }
 0x51b   :  { %v1411_v5 = vunpack.i.h.bf16 %v1409_v4  ;;  %v1410_v6 = vunpack.i.l.bf16 %v1409_v4 }
 0x51d   :  { %v1353_v7 = vpack.c.bf16 %v1411_v5, %v1410_v6 }
 0x51e   :  { %v565_v10 = vpop.xlane.xlu0 %564 }
 0x51f   :  { %1354 = vmatprep.subr.bf16.mxu0 %v1353_v7  ;;  %1440 = vrcp.f32 %v565_v10 }
 0x520   :  { %1356 = vmatpush3.bf16.msra.mxu0 %v1353_v7 }
 0x521   :  { %v1437_v16 = vpop.eup %1436  ;;  %1285 = vmatprep.subr.mxu0 %v739_v31 }
 0x522   :  { %v1439_v23 = vpop.eup %1438  ;;  %v578_v24 = vmul.f32 %v1437_v16, %v1423_v49 }
 0x523   :  { %1274 = vmatmul.mubr.msk.f32.vlgmr.msra.gmra.mrb[2].mxu0 %vm496_vm4, %v572_v11  ;;  %v580_v25 = vmul.f32 %v1439_v23, %v1773_v41 }
 0x524   :  { %1276 = vmatprep.mubr.msk.f32.mxu0 %vm496_vm4, %v574_v14  ;;  %1286 = vmatpush3.msra.mxu0 %v739_v31 }
 0x525   :  { %1290 = vmatprep.subr.mxu0 %v738_v32 }
 0x527   :  { %1277 = vmatmul.mubr.msk.f32.gmra.mrb[4].mxu0 %vm496_vm4, %v576_v13 }
 0x528   :  { %1279 = vmatprep.mubr.msk.f32.mxu0 %vm496_vm4, %v578_v24 }
 0x529   :  { %v1441_v26 = vpop.eup %1440 }
 0x52a   :  { %v582_v27 = vmul.f32 %v1441_v26, %v1786_v15 }
 0x52b   :  { %1280 = vmatmul.mubr.msk.f32.gmra.mrb[6].mxu0 %vm496_vm4, %v580_v25 }
 0x52c   :  { %1282 = vmatprep.mubr.msk.f32.mxu0 %vm496_vm4, %v582_v27 }
 0x54b   :  { %v568_v28 = vpop.xlane.xlu1 %567 }
 0x54c   :  { %1442 = vrcp.f32 %v568_v28 }
 0x556   :  { %v1443_v29 = vpop.eup %1442 }
 0x557   :  { %v584_v30 = vmul.f32 %v1443_v29, %v1427_v52 }
 0x559   :  { %1283 = vmatmul.mubr.msk.f32.gmra.mrb[8].mxu0 %vm496_vm4, %v584_v30 }
 0x5f6   :  { %v1275_v33 = vpop.f32.mrb[2].mxu0 }
 0x5f7   :  { %v699_v35 = vpop.f32.mrb[3].mxu0  ;;  %1287 = vmatprep.mubr.msk.f32.mxu0 %vm358_vm2, %v1275_v33 }
 0x5fa   :  { %v1278_v36 = vpop.f32.mrb[4].mxu0 }
 0x5fb   :  { %v709_v37 = vpop.f32.mrb[5].mxu0 }
 0x5fe   :  { %v1281_v38 = vpop.f32.mrb[6].mxu0 }
 0x5ff   :  { %v719_v39 = vpop.f32.mrb[7].mxu0  ;;  %1288 = vmatmul.mubr.msk.f32.vlgmr.msra.gmra.mrb[10].mxu0 %vm358_vm2, %v1281_v38 }
 0x600   :  { %1292 = vmatprep.mubr.msk.f32.mxu0 %vm358_vm2, %v699_v35  ;;  %1291 = vmatpush3.msra.mxu0 %v738_v32 }
 0x601   :  { %1295 = vmatprep.subr.mxu0 %v740_v34 }
 0x607   :  { %1293 = vmatmul.mubr.msk.f32.vlgmr.msra.gmra.mrb[10].mxu0 %vm358_vm2, %v719_v39 }
 0x608   :  { %1297 = vmatprep.mubr.msk.f32.mxu0 %vm358_vm2, %v709_v37  ;;  %1296 = vmatpush3.msra.mxu0 %v740_v34 }
 0x609   :  { %1300 = vmatprep.subr.mxu0 %v741_v40 }
 0x62c   :  { %v1284_v41 = vpop.f32.mrb[8].mxu0 }
 0x62d   :  { %v729_v42 = vpop.f32.mrb[9].mxu0 }
 0x62e   :  { %1298 = vmatmul.mubr.msk.f32.vlgmr.msra.gmra.mrb[10].mxu0 %vm358_vm2, %v729_v42 }
 0x62f   :  { %1301 = vmatpush3.msra.mxu0 %v741_v40  ;;  %1302 = vmatprep.mubr.msk.f32.mxu0 %vm358_vm2, %v1278_v36 }
 0x636   :  { %1303 = vmatmul.mubr.msk.f32.vlgmr.msra.gmra.mrb[10].mxu0 %vm358_vm2, %v1284_v41 }
 0x709   :  { %v1304_v44 = vpop.f32.mrb[10].mxu0 }
 0x70a   :  { %v1078_v45 = vadd.f32 %v1304_v44, %v1141_v43  ;;  %v1059_v46 = vpop.f32.mrb[11].mxu0 }
 0x70b   :  { %v1077_v47 = vadd.f32 %v1141_v43, %v1059_v46 }
 0x70c   :  { %1080 = vst.msk [vmem:[#allocation5 + $0x8] sm:$0xff] %vm60_vm0, %v1078_v45 }
 0x70d   :  { %1079 = vst.msk [vmem:[#allocation5] sm:$0xff] %vm60_vm0, %v1077_v47 }
 0x70e   :  { %1477 = shalt.err (!%p1474_p12)
}
 0x70f   :  { %s1478_s29 = scalar_lea.hbm %s1857_s9, 256 }
 0x710   :  { %p1479_p13 = scmp.ne.s32.totalorder %s1857_s9, %s1478_s29  ;;  %p1482_p0 = scmp.lt.u32.totalorder %s1478_s29, %s1857_s9 }
 0x712   :  { %p1484_p1 = pnand %p1482_p0, %p1479_p13 }
 0x714   :  { %1487 = shalt.err (!%p1484_p1)
}
 0x715   :  { %1092 = dma.vmem_to_hbm [thread:$0]  %s1087_s5, 256, %s1857_s9, [#allocation4], %s1493_s19, %s1493_s19, %s1494_s20  }
 0x716   :  { %1490 = dma.done.wait [#allocation4], 256  }
 0x717   :  { %1491 = vsyncadd [#allocation4], 4294967040 }
 0x718   :  { %1096 = vsyncpa [#allocation3], 1 }
 0x719   :  { %1097 = vsyncpa [#allocation4], 1 }

</bundles_post_ra>
